<compile_context>
chip_gen: v7x
topology: tpu7x:2x2x1
jax: 0.10.0
libtpu: 0.0.40
codegen_flags: <defaults>
</compile_context>

<pallas_src>
import functools

import jax
import jax.numpy as jnp
from jax.experimental import pallas as pl
from jax.experimental.pallas import tpu as pltpu


def _round_up(v, m):
    return (v + m - 1) // m * m


def _cdiv(a, b):
    return -(-a // b)


# ----------------------------------------------------------------------------- kernel
def _fused_mlp_kernel(x_ref, *refs, activation, n_hidden):
    """Fused MLP body.

    refs = (w0, b0, w1, b1, ..., w_out, b_out, o_ref).
    Weights and inter-layer activations are bf16 (MXU-native); accumulation, bias
    add and the activation stay in f32 (v5e has no bf16 VPU/EUP path).
    Inter-layer activations never leave vregs/VMEM — no HBM traffic between layers.
    """
    o_ref = refs[-1]
    param_refs = refs[:-1]

    h = x_ref[...]                                  # bf16 tile, no f32 round-trip
    for li in range(n_hidden + 1):
        w = param_refs[2 * li][...]                 # (d_in, d_out) bf16, VMEM-resident
        b = param_refs[2 * li + 1][...]             # (1, d_out) f32, broadcasts
        y = jnp.dot(h, w, preferred_element_type=jnp.float32) + b   # f32 accumulate
        if li < n_hidden:                           # hidden LinearBlock -> activation
            if activation == "relu":
                y = jnp.maximum(y, 0.0)
            elif activation == "tanh":
                y = jnp.tanh(y)
            elif activation == "sigmoid":
                y = jax.nn.sigmoid(y)
            # None / "linear" -> identity
            h = y.astype(jnp.bfloat16)              # back to bf16 for next MXU pass
        else:
            o_ref[...] = y.astype(o_ref.dtype)      # bf16, lane-dense unmasked store


# ------------------------------------------------------------------- one-time param prep
def prepare_params(params):
    """One-time preprocessing (do NOT call per forward):

    * weights -> bf16, biases -> (1, d) f32
    * output layer zero-padded to a 128-lane multiple (lane-dense stores)
    """
    blocks = params["blocks"]
    w_out, b_out = params["output"]
    n_classes = w_out.shape[1]
    out_pad = _round_up(max(n_classes, 128), 128)

    layers = []
    for (w, b) in blocks:
        layers.append((jnp.asarray(w, jnp.bfloat16),
                       jnp.asarray(b, jnp.float32).reshape(1, -1)))

    w_out_p = jnp.zeros((w_out.shape[0], out_pad), jnp.bfloat16)
    w_out_p = w_out_p.at[:, :n_classes].set(w_out.astype(jnp.bfloat16))
    b_out_p = jnp.zeros((1, out_pad), jnp.float32)
    b_out_p = b_out_p.at[0, :n_classes].set(b_out.astype(jnp.float32))
    layers.append((w_out_p, b_out_p))

    return {"layers": tuple(layers), "n_classes": n_classes, "n_hidden": len(blocks)}


# --------------------------------------------------------------------------- launch path
def _launch(x_p, layers, bt, steps, in_dim, out_pad, activation, n_hidden,
            vmem_limit, single_buffer_weights):
    flat_inputs = [x_p]
    in_specs = [pl.BlockSpec((bt, in_dim), lambda i: (i, 0))]
    for (w, b) in layers:
        flat_inputs += [w, b]
        if single_buffer_weights:
            # constant index_map -> block never changes; single buffer halves
            # resident-parameter VMEM (important under v7x's 64 MiB VMEM).
            in_specs += [
                pl.BlockSpec(w.shape, lambda i: (0, 0), pipeline_mode=pl.Buffered(1)),
                pl.BlockSpec(b.shape, lambda i: (0, 0), pipeline_mode=pl.Buffered(1)),
            ]
        else:
            in_specs += [
                pl.BlockSpec(w.shape, lambda i: (0, 0)),
                pl.BlockSpec(b.shape, lambda i: (0, 0)),
            ]

    kernel = functools.partial(_fused_mlp_kernel, activation=activation,
                               n_hidden=n_hidden)
    return pl.pallas_call(
        kernel,
        out_shape=jax.ShapeDtypeStruct((bt * steps, out_pad), jnp.bfloat16),
        grid=(steps,),
        in_specs=in_specs,
        out_specs=pl.BlockSpec((bt, out_pad), lambda i: (i, 0)),
        compiler_params=pltpu.CompilerParams(
            dimension_semantics=("parallel",),      # batch grid sharded across TCs (v7x)
            vmem_limit_bytes=vmem_limit),
    )(*flat_inputs)


def embedding_classifier_forward(prepped, x, activation="relu", dropout_p=None,
                                 batch_tile=512):
    """Forward pass of EmbeddingClassifier as a single fused pallas_call.

    `prepped` must come from `prepare_params` (raw params are auto-prepped as a
    convenience, but callers should prep once and reuse).
    dropout_p is accepted for API parity but ignored (eval mode).
    """
    if "layers" not in prepped:                     # convenience: raw params passed
        prepped = prepare_params(prepped)
    layers = prepped["layers"]
    n_classes = prepped["n_classes"]
    n_hidden = prepped["n_hidden"]
    out_pad = layers[-1][0].shape[1]

    batch, in_dim = x.shape
    out_dtype = x.dtype

    # ---- batch grid: bf16 tiles need 16-row granularity; >=2 steps when possible ----
    SUB = 16
    bp = _round_up(batch, SUB)
    if bp <= SUB:
        steps = 1                                   # too small to split
    elif bp <= 2 * batch_tile:
        steps = 2                                   # keep both v7x TensorCores busy
    else:
        steps = _cdiv(bp, batch_tile)
    bt = _round_up(_cdiv(bp, steps), SUB)
    batch_pad = bt * steps

    # ---- bf16 input stream: halves per-step DMA bytes; f32 accumulation in-kernel ----
    x_bf = x.astype(jnp.bfloat16)
    if batch_pad != batch:
        x_bf = jnp.pad(x_bf, ((0, batch_pad - batch), (0, 0)))

    # ---- explicit VMEM budget (resident params x1 + double-buffered I/O tiles) ----
    param_bytes = sum(w.size * w.dtype.itemsize + b.size * b.dtype.itemsize
                      for (w, b) in layers)
    max_width = max([in_dim] + [w.shape[1] for (w, _) in layers])
    io_bytes = 2 * 2 * bt * (in_dim + out_pad)      # 2 buffers, bf16 in/out tiles
    act_bytes = 2 * bt * max_width * 4              # in-flight f32 intermediates slack
    vmem_limit = int(min(max(param_bytes + io_bytes + act_bytes + (2 << 20), 32 << 20),
                         100 << 20))

    try:
        out_padded = _launch(x_bf, layers, bt, steps, in_dim, out_pad, activation,
                             n_hidden, vmem_limit, single_buffer_weights=True)
    except Exception:
        # Fallback for environments where pipeline_mode=pl.Buffered(1) is not
        # supported on pallas_call: default double-buffered weights (still correct).
        out_padded = _launch(x_bf, layers, bt, steps, in_dim, out_pad, activation,
                             n_hidden, vmem_limit, single_buffer_weights=False)

    return out_padded[:batch, :n_classes].astype(out_dtype)


# ------------------------------------------------------------------------------- helpers
def init_params(key, in_dims, out_dims, output_in, output_out, dtype=jnp.float32):
    """Deterministic synthetic parameters matching the module's __init__ shapes."""
    params = {"blocks": [], "output": None}
    for (di, do) in zip(in_dims, out_dims):
        key, kw, kb = jax.random.split(key, 3)
        w = jax.random.normal(kw, (di, do), dtype) * (1.0 / jnp.sqrt(di))
        b = jax.random.normal(kb, (do,), dtype) * 0.01
        params["blocks"].append((w, b))
    key, kw, kb = jax.random.split(key, 3)
    w_out = jax.random.normal(kw, (output_in, output_out), dtype) * (
        1.0 / jnp.sqrt(output_in)
    )
    b_out = jax.random.normal(kb, (output_out,), dtype) * 0.01
    params["output"] = (w_out, b_out)
    return params


def _reference_forward(params, x, activation="relu"):
    """Pure-JAX f32 reference (matches the PyTorch module's forward)."""
    for (w, b) in params["blocks"]:
        x = x @ w + b
        if activation == "relu":
            x = jnp.maximum(x, 0.0)
        elif activation == "tanh":
            x = jnp.tanh(x)
        elif activation == "sigmoid":
            x = jax.nn.sigmoid(x)
    w_out, b_out = params["output"]
    return x @ w_out + b_out


if __name__ == "__main__":
    # Small config consistent with the module:
    #   linear: in_dim=[32, 64], out_dim=[64, 64], activation='relu'
    #   output: in_dim=64, out_dim=n_classes=4
    batch = 8
    in_dims = [32, 64]
    out_dims = [64, 64]
    n_classes = 4

    key = jax.random.PRNGKey(0)
    key, kx = jax.random.split(key)
    x = jax.random.normal(kx, (batch, in_dims[0]), jnp.float32)

    params = init_params(key, in_dims, out_dims, out_dims[-1], n_classes)
    prepped = prepare_params(params)           # one-time prep, hoisted off launch path

    logits = embedding_classifier_forward(prepped, x, activation="relu")
    jax.block_until_ready(logits)
    assert logits.shape == (batch, n_classes)
    assert logits.dtype == x.dtype

    # Sanity-check against the pure-JAX f32 reference (tolerance for bf16 math).
    ref = _reference_forward(params, x, activation="relu")
    assert jnp.allclose(logits, ref, atol=1e-1, rtol=1e-1), "mismatch vs reference"

    print("KERNEL_OK")
</pallas_src>

<mosaic_0001>
module attributes {stable_mosaic.version = 11 : i64} {
  func.func @_fused_mlp_kernel(%arg0: i32, %arg1: memref<16x32xbf16, #tpu.memory_space<vmem>>, %arg2: memref<32x64xbf16, #tpu.memory_space<vmem>>, %arg3: memref<1x64xf32, #tpu.memory_space<vmem>>, %arg4: memref<64x64xbf16, #tpu.memory_space<vmem>>, %arg5: memref<1x64xf32, #tpu.memory_space<vmem>>, %arg6: memref<64x128xbf16, #tpu.memory_space<vmem>>, %arg7: memref<1x128xf32, #tpu.memory_space<vmem>>, %arg8: memref<16x128xbf16, #tpu.memory_space<vmem>>) attributes {dimension_semantics = [#tpu.dimension_semantics<parallel>], iteration_bounds = array<i64: 1>, scalar_prefetch = 0 : i64, scratch_operands = 0 : i64, tpu.core_type = #tpu.core_type<tc>, window_params = [{transform_indices = @transform_0, window_bounds = array<i64: 16, 32>}, {pipeline_mode = #tpu.pipeline_mode<synchronous>, transform_indices = @transform_1, window_bounds = array<i64: 32, 64>}, {pipeline_mode = #tpu.pipeline_mode<synchronous>, transform_indices = @transform_2, window_bounds = array<i64: 1, 64>}, {pipeline_mode = #tpu.pipeline_mode<synchronous>, transform_indices = @transform_3, window_bounds = array<i64: 64, 64>}, {pipeline_mode = #tpu.pipeline_mode<synchronous>, transform_indices = @transform_4, window_bounds = array<i64: 1, 64>}, {pipeline_mode = #tpu.pipeline_mode<synchronous>, transform_indices = @transform_5, window_bounds = array<i64: 64, 128>}, {pipeline_mode = #tpu.pipeline_mode<synchronous>, transform_indices = @transform_6, window_bounds = array<i64: 1, 128>}, {transform_indices = @transform_7, window_bounds = array<i64: 16, 128>}]} {
    %c0 = arith.constant 0 : index
    %c0_0 = arith.constant 0 : index
    %0 = vector.load %arg1[%c0, %c0_0] : memref<16x32xbf16, #tpu.memory_space<vmem>>, vector<16x32xbf16>
    %c0_1 = arith.constant 0 : index
    %c0_2 = arith.constant 0 : index
    %1 = vector.load %arg2[%c0_1, %c0_2] : memref<32x64xbf16, #tpu.memory_space<vmem>>, vector<32x64xbf16>
    %c0_3 = arith.constant 0 : index
    %c0_4 = arith.constant 0 : index
    %2 = vector.load %arg3[%c0_3, %c0_4] : memref<1x64xf32, #tpu.memory_space<vmem>>, vector<1x64xf32>
    %cst = arith.constant dense<0.000000e+00> : vector<16x64xf32>
    %3 = tpu.matmul %0, %1, %cst {dimension_numbers = #tpu.dot_dimension_numbers<[1], [0], [0], [1], [0, 0, 1, 1], [], []>} : vector<16x32xbf16>, vector<32x64xbf16>, vector<16x64xf32> -> vector<16x64xf32>
    %4 = vector.broadcast %2 : vector<1x64xf32> to vector<16x64xf32>
    %5 = arith.addf %3, %4 : vector<16x64xf32>
    %cst_5 = arith.constant 0.000000e+00 : f32
    %6 = vector.broadcast %cst_5 : f32 to vector<16x64xf32>
    %7 = arith.maximumf %5, %6 : vector<16x64xf32>
    %8 = arith.truncf %7 : vector<16x64xf32> to vector<16x64xbf16>
    %c0_6 = arith.constant 0 : index
    %c0_7 = arith.constant 0 : index
    %9 = vector.load %arg4[%c0_6, %c0_7] : memref<64x64xbf16, #tpu.memory_space<vmem>>, vector<64x64xbf16>
    %c0_8 = arith.constant 0 : index
    %c0_9 = arith.constant 0 : index
    %10 = vector.load %arg5[%c0_8, %c0_9] : memref<1x64xf32, #tpu.memory_space<vmem>>, vector<1x64xf32>
    %cst_10 = arith.constant dense<0.000000e+00> : vector<16x64xf32>
    %11 = tpu.matmul %8, %9, %cst_10 {dimension_numbers = #tpu.dot_dimension_numbers<[1], [0], [0], [1], [0, 0, 1, 1], [], []>} : vector<16x64xbf16>, vector<64x64xbf16>, vector<16x64xf32> -> vector<16x64xf32>
    %12 = vector.broadcast %10 : vector<1x64xf32> to vector<16x64xf32>
    %13 = arith.addf %11, %12 : vector<16x64xf32>
    %cst_11 = arith.constant 0.000000e+00 : f32
    %14 = vector.broadcast %cst_11 : f32 to vector<16x64xf32>
    %15 = arith.maximumf %13, %14 : vector<16x64xf32>
    %16 = arith.truncf %15 : vector<16x64xf32> to vector<16x64xbf16>
    %c0_12 = arith.constant 0 : index
    %c0_13 = arith.constant 0 : index
    %17 = vector.load %arg6[%c0_12, %c0_13] : memref<64x128xbf16, #tpu.memory_space<vmem>>, vector<64x128xbf16>
    %c0_14 = arith.constant 0 : index
    %c0_15 = arith.constant 0 : index
    %18 = vector.load %arg7[%c0_14, %c0_15] : memref<1x128xf32, #tpu.memory_space<vmem>>, vector<1x128xf32>
    %cst_16 = arith.constant dense<0.000000e+00> : vector<16x128xf32>
    %19 = tpu.matmul %16, %17, %cst_16 {dimension_numbers = #tpu.dot_dimension_numbers<[1], [0], [0], [1], [0, 0, 1, 1], [], []>} : vector<16x64xbf16>, vector<64x128xbf16>, vector<16x128xf32> -> vector<16x128xf32>
    %20 = vector.broadcast %18 : vector<1x128xf32> to vector<16x128xf32>
    %21 = arith.addf %19, %20 : vector<16x128xf32>
    %22 = arith.truncf %21 : vector<16x128xf32> to vector<16x128xbf16>
    %c0_17 = arith.constant 0 : index
    %c0_18 = arith.constant 0 : index
    %23 = vector.load %arg8[%c0_17, %c0_18] : memref<16x128xbf16, #tpu.memory_space<vmem>>, vector<16x128xbf16>
    tpu.vector_store %arg8[%c0_17, %c0_18], %22 {strides = array<i32>} : memref<16x128xbf16, #tpu.memory_space<vmem>>, vector<16x128xbf16>,
    return
  }
  func.func @transform_0(%arg0: i32) -> (i32, i32) {
    %c0_i32 = arith.constant 0 : i32
    %c0_i32_0 = arith.constant 0 : i32
    return %arg0, %c0_i32 : i32, i32
  }
  func.func @transform_1(%arg0: i32) -> (i32, i32) {
    %c0_i32 = arith.constant 0 : i32
    %c0_i32_0 = arith.constant 0 : i32
    %c0_i32_1 = arith.constant 0 : i32
    return %c0_i32, %c0_i32_0 : i32, i32
  }
  func.func @transform_2(%arg0: i32) -> (i32, i32) {
    %c0_i32 = arith.constant 0 : i32
    %c0_i32_0 = arith.constant 0 : i32
    %c0_i32_1 = arith.constant 0 : i32
    return %c0_i32, %c0_i32_0 : i32, i32
  }
  func.func @transform_3(%arg0: i32) -> (i32, i32) {
    %c0_i32 = arith.constant 0 : i32
    %c0_i32_0 = arith.constant 0 : i32
    %c0_i32_1 = arith.constant 0 : i32
    return %c0_i32, %c0_i32_0 : i32, i32
  }
  func.func @transform_4(%arg0: i32) -> (i32, i32) {
    %c0_i32 = arith.constant 0 : i32
    %c0_i32_0 = arith.constant 0 : i32
    %c0_i32_1 = arith.constant 0 : i32
    return %c0_i32, %c0_i32_0 : i32, i32
  }
  func.func @transform_5(%arg0: i32) -> (i32, i32) {
    %c0_i32 = arith.constant 0 : i32
    %c0_i32_0 = arith.constant 0 : i32
    %c0_i32_1 = arith.constant 0 : i32
    return %c0_i32, %c0_i32_0 : i32, i32
  }
  func.func @transform_6(%arg0: i32) -> (i32, i32) {
    %c0_i32 = arith.constant 0 : i32
    %c0_i32_0 = arith.constant 0 : i32
    %c0_i32_1 = arith.constant 0 : i32
    return %c0_i32, %c0_i32_0 : i32, i32
  }
  func.func @transform_7(%arg0: i32) -> (i32, i32) {
    %c0_i32 = arith.constant 0 : i32
    %c0_i32_0 = arith.constant 0 : i32
    return %arg0, %c0_i32 : i32, i32
  }
}

module attributes {stable_mosaic.version = 11 : i64} {
  func.func @_fused_mlp_kernel(%arg0: i32, %arg1: memref<16x32xbf16, #tpu.memory_space<vmem>>, %arg2: memref<32x64xbf16, #tpu.memory_space<vmem>>, %arg3: memref<1x64xf32, #tpu.memory_space<vmem>>, %arg4: memref<64x64xbf16, #tpu.memory_space<vmem>>, %arg5: memref<1x64xf32, #tpu.memory_space<vmem>>, %arg6: memref<64x128xbf16, #tpu.memory_space<vmem>>, %arg7: memref<1x128xf32, #tpu.memory_space<vmem>>, %arg8: memref<16x128xbf16, #tpu.memory_space<vmem>>) attributes {dimension_semantics = [#tpu.dimension_semantics<parallel>], iteration_bounds = array<i64: 1>, scalar_prefetch = 0 : i64, scratch_operands = 0 : i64, tpu.core_type = #tpu.core_type<tc>, window_params = [{transform_indices = @transform_0, window_bounds = array<i64: 16, 32>}, {pipeline_mode = #tpu.pipeline_mode<synchronous>, transform_indices = @transform_1, window_bounds = array<i64: 32, 64>}, {pipeline_mode = #tpu.pipeline_mode<synchronous>, transform_indices = @transform_2, window_bounds = array<i64: 1, 64>}, {pipeline_mode = #tpu.pipeline_mode<synchronous>, transform_indices = @transform_3, window_bounds = array<i64: 64, 64>}, {pipeline_mode = #tpu.pipeline_mode<synchronous>, transform_indices = @transform_4, window_bounds = array<i64: 1, 64>}, {pipeline_mode = #tpu.pipeline_mode<synchronous>, transform_indices = @transform_5, window_bounds = array<i64: 64, 128>}, {pipeline_mode = #tpu.pipeline_mode<synchronous>, transform_indices = @transform_6, window_bounds = array<i64: 1, 128>}, {transform_indices = @transform_7, window_bounds = array<i64: 16, 128>}]} {
    %c0 = arith.constant 0 : index
    %c0_0 = arith.constant 0 : index
    %0 = vector.load %arg1[%c0, %c0_0] : memref<16x32xbf16, #tpu.memory_space<vmem>>, vector<16x32xbf16>
    %c0_1 = arith.constant 0 : index
    %c0_2 = arith.constant 0 : index
    %1 = vector.load %arg2[%c0_1, %c0_2] : memref<32x64xbf16, #tpu.memory_space<vmem>>, vector<32x64xbf16>
    %c0_3 = arith.constant 0 : index
    %c0_4 = arith.constant 0 : index
    %2 = vector.load %arg3[%c0_3, %c0_4] : memref<1x64xf32, #tpu.memory_space<vmem>>, vector<1x64xf32>
    %cst = arith.constant dense<0.000000e+00> : vector<16x64xf32>
    %3 = tpu.matmul %0, %1, %cst {dimension_numbers = #tpu.dot_dimension_numbers<[1], [0], [0], [1], [0, 0, 1, 1], [], []>} : vector<16x32xbf16>, vector<32x64xbf16>, vector<16x64xf32> -> vector<16x64xf32>
    %4 = vector.broadcast %2 : vector<1x64xf32> to vector<16x64xf32>
    %5 = arith.addf %3, %4 : vector<16x64xf32>
    %cst_5 = arith.constant 0.000000e+00 : f32
    %6 = vector.broadcast %cst_5 : f32 to vector<16x64xf32>
    %7 = arith.maximumf %5, %6 : vector<16x64xf32>
    %8 = arith.truncf %7 : vector<16x64xf32> to vector<16x64xbf16>
    %c0_6 = arith.constant 0 : index
    %c0_7 = arith.constant 0 : index
    %9 = vector.load %arg4[%c0_6, %c0_7] : memref<64x64xbf16, #tpu.memory_space<vmem>>, vector<64x64xbf16>
    %c0_8 = arith.constant 0 : index
    %c0_9 = arith.constant 0 : index
    %10 = vector.load %arg5[%c0_8, %c0_9] : memref<1x64xf32, #tpu.memory_space<vmem>>, vector<1x64xf32>
    %cst_10 = arith.constant dense<0.000000e+00> : vector<16x64xf32>
    %11 = tpu.matmul %8, %9, %cst_10 {dimension_numbers = #tpu.dot_dimension_numbers<[1], [0], [0], [1], [0, 0, 1, 1], [], []>} : vector<16x64xbf16>, vector<64x64xbf16>, vector<16x64xf32> -> vector<16x64xf32>
    %12 = vector.broadcast %10 : vector<1x64xf32> to vector<16x64xf32>
    %13 = arith.addf %11, %12 : vector<16x64xf32>
    %cst_11 = arith.constant 0.000000e+00 : f32
    %14 = vector.broadcast %cst_11 : f32 to vector<16x64xf32>
    %15 = arith.maximumf %13, %14 : vector<16x64xf32>
    %16 = arith.truncf %15 : vector<16x64xf32> to vector<16x64xbf16>
    %c0_12 = arith.constant 0 : index
    %c0_13 = arith.constant 0 : index
    %17 = vector.load %arg6[%c0_12, %c0_13] : memref<64x128xbf16, #tpu.memory_space<vmem>>, vector<64x128xbf16>
    %c0_14 = arith.constant 0 : index
    %c0_15 = arith.constant 0 : index
    %18 = vector.load %arg7[%c0_14, %c0_15] : memref<1x128xf32, #tpu.memory_space<vmem>>, vector<1x128xf32>
    %cst_16 = arith.constant dense<0.000000e+00> : vector<16x128xf32>
    %19 = tpu.matmul %16, %17, %cst_16 {dimension_numbers = #tpu.dot_dimension_numbers<[1], [0], [0], [1], [0, 0, 1, 1], [], []>} : vector<16x64xbf16>, vector<64x128xbf16>, vector<16x128xf32> -> vector<16x128xf32>
    %20 = vector.broadcast %18 : vector<1x128xf32> to vector<16x128xf32>
    %21 = arith.addf %19, %20 : vector<16x128xf32>
    %22 = arith.truncf %21 : vector<16x128xf32> to vector<16x128xbf16>
    %c0_17 = arith.constant 0 : index
    %c0_18 = arith.constant 0 : index
    %23 = vector.load %arg8[%c0_17, %c0_18] : memref<16x128xbf16, #tpu.memory_space<vmem>>, vector<16x128xbf16>
    tpu.vector_store %arg8[%c0_17, %c0_18], %22 {strides = array<i32>} : memref<16x128xbf16, #tpu.memory_space<vmem>>, vector<16x128xbf16>,
    return
  }
  func.func @transform_0(%arg0: i32) -> (i32, i32) {
    %c0_i32 = arith.constant 0 : i32
    %c0_i32_0 = arith.constant 0 : i32
    return %arg0, %c0_i32 : i32, i32
  }
  func.func @transform_1(%arg0: i32) -> (i32, i32) {
    %c0_i32 = arith.constant 0 : i32
    %c0_i32_0 = arith.constant 0 : i32
    %c0_i32_1 = arith.constant 0 : i32
    return %c0_i32, %c0_i32_0 : i32, i32
  }
  func.func @transform_2(%arg0: i32) -> (i32, i32) {
    %c0_i32 = arith.constant 0 : i32
    %c0_i32_0 = arith.constant 0 : i32
    %c0_i32_1 = arith.constant 0 : i32
    return %c0_i32, %c0_i32_0 : i32, i32
  }
  func.func @transform_3(%arg0: i32) -> (i32, i32) {
    %c0_i32 = arith.constant 0 : i32
    %c0_i32_0 = arith.constant 0 : i32
    %c0_i32_1 = arith.constant 0 : i32
    return %c0_i32, %c0_i32_0 : i32, i32
  }
  func.func @transform_4(%arg0: i32) -> (i32, i32) {
    %c0_i32 = arith.constant 0 : i32
    %c0_i32_0 = arith.constant 0 : i32
    %c0_i32_1 = arith.constant 0 : i32
    return %c0_i32, %c0_i32_0 : i32, i32
  }
  func.func @transform_5(%arg0: i32) -> (i32, i32) {
    %c0_i32 = arith.constant 0 : i32
    %c0_i32_0 = arith.constant 0 : i32
    %c0_i32_1 = arith.constant 0 : i32
    return %c0_i32, %c0_i32_0 : i32, i32
  }
  func.func @transform_6(%arg0: i32) -> (i32, i32) {
    %c0_i32 = arith.constant 0 : i32
    %c0_i32_0 = arith.constant 0 : i32
    %c0_i32_1 = arith.constant 0 : i32
    return %c0_i32, %c0_i32_0 : i32, i32
  }
  func.func @transform_7(%arg0: i32) -> (i32, i32) {
    %c0_i32 = arith.constant 0 : i32
    %c0_i32_0 = arith.constant 0 : i32
    return %arg0, %c0_i32 : i32, i32
  }
}

</mosaic_0001>

<bundles_post_ra>
// kernel: tpu_custom_call.1
= control target key start
LH: loop header
LB: loop body
LE: loop exit
PB: predicated region body
PF: predicated region fallthrough
CT: control target
= control target key end

     0   :  { %12 = vsyncpa [#allocation3], 0  ;;  %s721_s0 = inlined_call_operand.hbm [shape: bf16[16,32], index: 0, kind: input, shape index: {}]   ;;  %s722_s1 = inlined_call_operand.hbm [shape: bf16[32,64], index: 1, kind: input, shape index: {}]   ;;  %s723_s2 = inlined_call_operand.vmem [shape: f32[1,64], index: 2, kind: input, shape index: {}]   ;;  %s724_s3 = inlined_call_operand.hbm [shape: bf16[64,64], index: 3, kind: input, shape index: {}]   ;;  %s725_s4 = inlined_call_operand.vmem [shape: f32[1,64], index: 4, kind: input, shape index: {}]   ;;  %s726_s5 = inlined_call_operand.hbm [shape: bf16[64,128], index: 5, kind: input, shape index: {}]   ;;  %s727_s6 = inlined_call_operand.vmem [shape: f32[1,128], index: 6, kind: input, shape index: {}]   ;;  %s728_s7 = inlined_call_operand.hbm [shape: bf16[16,128], index: 7, kind: output, shape index: {}]  }
   0x1   :  { %13 = vsyncpa [#allocation6], 0 }
   0x2   :  { %14 = vsyncpa [#allocation9], 0 }
   0x3   :  { %15 = vsyncpa [#allocation4], 0  ;;  %s569_s24 = smov [#allocation5]   ;;  %s570_s26 = smov [#allocation2]  }
   0x4   :  { %s33_s25 = sshll.u32 %s569_s24, 4  ;;  %s21_s27 = sshll.u32 %s570_s26, 4  ;;  %s34_s25 = int_to_ptr.vmem [resolvable:$true] %s33_s25  ;;  %s618_s27 = int_to_ptr.vmem [resolvable:$true] %s21_s27 }
   0x5   :  { %s451_s30 = scalar_lea.hbm %s722_s1, 256 }
   0x6   :  { %p452_p0 = scmp.ne.s32.totalorder %s722_s1, %s451_s30  ;;  %p455_p1 = scmp.lt.u32.totalorder %s451_s30, %s722_s1 }
   0x8   :  { %p457_p2 = pnand %p455_p1, %p452_p0 }
   0xa   :  { %460 = shalt.err (!%p457_p2)
}
   0xb   :  { %s461_s12 = scalar_lea.vmem %s34_s25, 256  ;;  %p466_p4 = scmp.lt.s32.totalorder %s34_s25, %s34_s25 }
   0xc   :  { %p462_p3 = scmp.ne.s32.totalorder %s34_s25, %s461_s12  ;;  %p467_p5 = scmp.lt.s32.totalorder %s461_s12, %s461_s12 }
   0xe   :  { %p468_p6 = por %p467_p5, %p466_p4 }
  0x10   :  { %p469_p7 = pnand %p468_p6, %p462_p3 }
  0x12   :  { %472 = shalt.err (!%p469_p7)
}
  0x13   :  { %s571_s13 = smov 64   ;;  %s572_s14 = smov 4  }
  0x14   :  { %39 = dma.hbm_to_vmem [thread:$0]  %s722_s1, 256, %s34_s25, [#allocation6], %s571_s13, %s571_s13, %s572_s14  }
  0x15   :  { %s473_s19 = scalar_lea.hbm %s721_s0, 128 }
  0x16   :  { %p474_p8 = scmp.ne.s32.totalorder %s721_s0, %s473_s19  ;;  %p477_p9 = scmp.lt.u32.totalorder %s473_s19, %s721_s0 }
  0x18   :  { %p479_p10 = pnand %p477_p9, %p474_p8 }
  0x1a   :  { %482 = shalt.err (!%p479_p10)
}
  0x1b   :  { %s483_s24 = scalar_lea.vmem %s618_s27, 128  ;;  %p488_p12 = scmp.lt.s32.totalorder %s618_s27, %s618_s27 }
  0x1c   :  { %p484_p11 = scmp.ne.s32.totalorder %s618_s27, %s483_s24  ;;  %p489_p13 = scmp.lt.s32.totalorder %s483_s24, %s483_s24 }
  0x1e   :  { %p490_p0 = por %p489_p13, %p488_p12 }
  0x20   :  { %p491_p1 = pnand %p490_p0, %p484_p11 }
  0x22   :  { %494 = shalt.err (!%p491_p1)
}
  0x23   :  { %27 = dma.hbm_to_vmem [thread:$0]  %s721_s0, 128, %s618_s27, [#allocation3], %s571_s13, %s571_s13, %s572_s14  }
  0x24   :  { %s573_s26 = smov [#allocation7]   ;;  %s574_s29 = smov [#allocation8]  }
  0x25   :  { %s47_s28 = sshll.u32 %s573_s26, 4  ;;  %s61_s30 = sshll.u32 %s574_s29, 4  ;;  %s48_s28 = int_to_ptr.vmem [resolvable:$true] %s47_s28  ;;  %s655_s30 = int_to_ptr.vmem [resolvable:$true] %s61_s30 }
  0x26   :  { %s495_s10 = scalar_lea.hbm %s724_s3, 512 }
  0x27   :  { %p496_p2 = scmp.ne.s32.totalorder %s724_s3, %s495_s10  ;;  %p499_p3 = scmp.lt.u32.totalorder %s495_s10, %s724_s3 }
  0x29   :  { %p501_p4 = pnand %p499_p3, %p496_p2 }
  0x2b   :  { %504 = shalt.err (!%p501_p4)
}
  0x2c   :  { %s505_s0 = scalar_lea.vmem %s48_s28, 512  ;;  %p510_p6 = scmp.lt.s32.totalorder %s48_s28, %s48_s28 }
  0x2d   :  { %p506_p5 = scmp.ne.s32.totalorder %s48_s28, %s505_s0  ;;  %p511_p7 = scmp.lt.s32.totalorder %s505_s0, %s505_s0 }
  0x2f   :  { %p512_p8 = por %p511_p7, %p510_p6 }
  0x31   :  { %p513_p9 = pnand %p512_p8, %p506_p5 }
  0x33   :  { %516 = shalt.err (!%p513_p9)
}
  0x34   :  { %53 = dma.hbm_to_vmem [thread:$0]  %s724_s3, 512, %s48_s28, [#allocation6], %s571_s13, %s571_s13, %s572_s14  }
  0x35   :  { %s517_s20 = scalar_lea.hbm %s726_s5, 512 }
  0x36   :  { %p518_p10 = scmp.ne.s32.totalorder %s726_s5, %s517_s20  ;;  %p521_p11 = scmp.lt.u32.totalorder %s517_s20, %s726_s5 }
  0x38   :  { %p523_p12 = pnand %p521_p11, %p518_p10 }
  0x3a   :  { %526 = shalt.err (!%p523_p12)
}
  0x3b   :  { %s527_s1 = scalar_lea.vmem %s655_s30, 512  ;;  %p532_p0 = scmp.lt.s32.totalorder %s655_s30, %s655_s30 }
  0x3c   :  { %p528_p13 = scmp.ne.s32.totalorder %s655_s30, %s527_s1  ;;  %p533_p1 = scmp.lt.s32.totalorder %s527_s1, %s527_s1 }
  0x3e   :  { %p534_p2 = por %p533_p1, %p532_p0 }
  0x40   :  { %p535_p3 = pnand %p534_p2, %p528_p13 }
  0x42   :  { %538 = shalt.err (!%p535_p3)
}
  0x43   :  { %67 = dma.hbm_to_vmem [thread:$0]  %s726_s5, 512, %s655_s30, [#allocation9], %s571_s13, %s571_s13, %s572_s14  }
  0x44   :  { %561 = dma.done.wait [#allocation3], 128  }
  0x45   :  { %562 = vsyncadd [#allocation3], 4294967168 }
  0x46   :  { %563 = dma.done.wait [#allocation6], 768  }
  0x47   :  { %564 = vsyncadd [#allocation6], 4294966528 }
  0x48   :  { %565 = dma.done.wait [#allocation9], 512  }
  0x49   :  { %566 = vsyncadd [#allocation9], 4294966784  ;;  %v575_v0 = vmov 0.0   ;;  %vm576_vm0 = vmmov 0   ;;  %v440_v1 = vld [vmem:[#allocation5] sm:$0xff]   ;;  %v441_v2 = vld [vmem:[#allocation5 + $0x8] sm:$0xff]  }
  0x4a   :  { %399 = vmatprep.subr.bf16.mxu0 %v575_v0  ;;  %403 = vmatprep.mubr.msk.bf16.mxu0 %vm576_vm0, %v575_v0  ;;  %v443_v3 = vld [vmem:[#allocation7] sm:$0xff]   ;;  %v442_v4 = vld [vmem:[#allocation2] sm:$0xff]   ;;  %vm113_vm1 = vcmask 261120   ;;  %v445_v6 = vld [vmem:[#allocation7 + $0x10] sm:$0xff]   ;;  %vm200_vm2 = vcmask 523264   ;;  %s577_s8 = smov [#allocation10]  }
  0x4b   :  { %407 = vmatprep.subr.bf16.mxu1 %v575_v0  ;;  %415 = vmatprep.mubr.msk.bf16.mxu1 %vm576_vm0, %v575_v0  ;;  %v444_v5 = vld [vmem:[#allocation7 + $0x8] sm:$0xff]   ;;  %v446_v7 = vld [vmem:[#allocation7 + $0x18] sm:$0xff]   ;;  %v447_v8 = vld [vmem:[#allocation8] sm:$0xff]  }
  0x4c   :  { %400 = vmatpush3.bf16.msra.mxu0 %v440_v1  ;;  %408 = vmatpush3.bf16.msra.mxu1 %v443_v3  ;;  %v448_v9 = vld [vmem:[#allocation8 + $0x8] sm:$0xff]   ;;  %v449_v20 = vld [vmem:[#allocation8 + $0x10] sm:$0xff]   ;;  %v450_v21 = vld [vmem:[#allocation8 + $0x18] sm:$0xff]  }
  0x4d   :  { %401 = vmatprep.subr.bf16.mxu0 %v575_v0  ;;  %409 = vmatprep.subr.bf16.mxu1 %v575_v0  ;;  %v360_v10 = vld [vmem:[%s723_s2] ss:$0 sm:$0xff] }
  0x4e   :  { %v365_v22 = vld [vmem:[%s725_s4] ss:$0 sm:$0xff]  ;;  %s346_s4 = sshll.u32 %s577_s8, 4  ;;  %s347_s4 = int_to_ptr.vmem [resolvable:$true] %s346_s4 }
  0x4f   :  { %v371_v32 = vld [vmem:[%s727_s6] ss:$0 sm:$0xff]  ;;  %s539_s9 = scalar_lea.vmem %s347_s4, 128  ;;  %p544_p5 = scmp.lt.s32.totalorder %s347_s4, %s347_s4 }
  0x50   :  { %402 = vmatpush3.bf16.msra.mxu0 %v441_v2  ;;  %410 = vmatpush3.bf16.msra.mxu1 %v444_v5  ;;  %p540_p4 = scmp.ne.s32.totalorder %s347_s4, %s539_s9  ;;  %p545_p6 = scmp.lt.s32.totalorder %s539_s9, %s539_s9 }
  0x51   :  { %419 = vmatprep.subr.bf16.mxu0 %v575_v0  ;;  %411 = vmatprep.subr.bf16.mxu1 %v575_v0 }
  0x52   :  { %p546_p7 = por %p545_p6, %p544_p5 }
  0x53   :  { %404 = vmatmul.mubr.msk.bf16.vlgmr.msra.gmra.mrb[0].mxu0 %vm113_vm1, %v442_v4 }
  0x54   :  { %427 = vmatprep.mubr.msk.bf16.mxu0 %vm576_vm0, %v575_v0  ;;  %412 = vmatpush3.bf16.msra.mxu1 %v445_v6  ;;  %p547_p8 = pnand %p546_p7, %p540_p4 }
  0x55   :  { %413 = vmatprep.subr.bf16.mxu1 %v575_v0  ;;  %420 = vmatpush3.bf16.msra.mxu0 %v447_v8 }
  0x56   :  { %421 = vmatprep.subr.bf16.mxu0 %v575_v0 }
  0x58   :  { %414 = vmatpush3.bf16.msra.mxu1 %v446_v7 }
  0x59   :  { %422 = vmatpush3.bf16.msra.mxu0 %v448_v9 }
  0x5a   :  { %423 = vmatprep.subr.bf16.mxu0 %v575_v0 }
  0x5d   :  { %424 = vmatpush3.bf16.msra.mxu0 %v449_v20 }
  0x5e   :  { %425 = vmatprep.subr.bf16.mxu0 %v575_v0 }
  0x61   :  { %426 = vmatpush3.bf16.msra.mxu0 %v450_v21 }
 0x126   :  { %v151_v11 = vpop.f32.mrb[0].mxu0 }
 0x127   :  { %v152_v12 = vadd.f32 %v360_v10, %v151_v11  ;;  %v405_v13 = vpop.f32.mrb[1].mxu0 }
 0x128   :  { %v154_v14 = vpop.f32.mrb[2].mxu0 }
 0x129   :  { %v155_v15 = vadd.f32 %v360_v10, %v154_v14  ;;  %v406_v16 = vpop.f32.mrb[3].mxu0  ;;  %v158_v17 = vmax.f32 %v152_v12, 0.0 }
 0x12b   :  { %v159_v18 = vmax.f32 %v155_v15, 0.0 }
 0x12d   :  { %v160_v19 = vpack.c.bf16 %v159_v18, %v158_v17 }
 0x12f   :  { %416 = vmatmul.mubr.msk.bf16.vlgmr.msra.gmra.mrb[0].mxu1 %vm200_vm2, %v160_v19 }
 0x202   :  { %v238_v23 = vpop.f32.mrb[0].mxu1 }
 0x203   :  { %v239_v24 = vadd.f32 %v365_v22, %v238_v23  ;;  %v417_v25 = vpop.f32.mrb[1].mxu1 }
 0x204   :  { %v241_v26 = vpop.f32.mrb[2].mxu1 }
 0x205   :  { %v242_v27 = vadd.f32 %v365_v22, %v241_v26  ;;  %v418_v28 = vpop.f32.mrb[3].mxu1  ;;  %v245_v29 = vmax.f32 %v239_v24, 0.0 }
 0x207   :  { %v246_v30 = vmax.f32 %v242_v27, 0.0 }
 0x209   :  { %v247_v31 = vpack.c.bf16 %v246_v30, %v245_v29 }
 0x20b   :  { %428 = vmatmul.mubr.msk.bf16.vlgmr.msra.gmra.mrb[4].mxu0 %vm200_vm2, %v247_v31 }
 0x2de   :  { %v324_v33 = vpop.f32.mrb[4].mxu0 }
 0x2df   :  { %v429_v34 = vpop.f32.mrb[5].mxu0  ;;  %v325_v36 = vadd.f32 %v371_v32, %v324_v33 }
 0x2e0   :  { %v327_v35 = vpop.f32.mrb[6].mxu0 }
 0x2e1   :  { %v328_v37 = vadd.f32 %v371_v32, %v327_v35  ;;  %v430_v38 = vpop.f32.mrb[7].mxu0 }
 0x2e3   :  { %v384_v39 = vpack.c.bf16 %v328_v37, %v325_v36 }
 0x2e5   :  { %385 = vst [vmem:[#allocation10] sm:$0xff] %v384_v39  }
 0x2e6   :  { %550 = shalt.err (!%p547_p8)
}
 0x2e7   :  { %s551_s11 = scalar_lea.hbm %s728_s7, 128 }
 0x2e8   :  { %p552_p9 = scmp.ne.s32.totalorder %s728_s7, %s551_s11  ;;  %p555_p10 = scmp.lt.u32.totalorder %s551_s11, %s728_s7 }
 0x2ea   :  { %p557_p11 = pnand %p555_p10, %p552_p9 }
 0x2ec   :  { %560 = shalt.err (!%p557_p11)
}
 0x2ed   :  { %352 = dma.vmem_to_hbm [thread:$0]  %s347_s4, 128, %s728_s7, [#allocation4], %s571_s13, %s571_s13, %s572_s14  }
 0x2ee   :  { %567 = dma.done.wait [#allocation4], 128  }
 0x2ef   :  { %568 = vsyncadd [#allocation4], 4294967168 }
 0x2f0   :  { %356 = vsyncpa [#allocation3], 1 }
 0x2f1   :  { %357 = vsyncpa [#allocation6], 1 }
 0x2f2   :  { %358 = vsyncpa [#allocation9], 1 }
 0x2f3   :  { %359 = vsyncpa [#allocation4], 1 }

// kernel: tpu_custom_call.1
= control target key start
LH: loop header
LB: loop body
LE: loop exit
PB: predicated region body
PF: predicated region fallthrough
CT: control target
= control target key end

     0   :  { %12 = vsyncpa [#allocation3], 0  ;;  %s721_s0 = inlined_call_operand.hbm [shape: bf16[16,32], index: 0, kind: input, shape index: {}]   ;;  %s722_s1 = inlined_call_operand.hbm [shape: bf16[32,64], index: 1, kind: input, shape index: {}]   ;;  %s723_s2 = inlined_call_operand.vmem [shape: f32[1,64], index: 2, kind: input, shape index: {}]   ;;  %s724_s3 = inlined_call_operand.hbm [shape: bf16[64,64], index: 3, kind: input, shape index: {}]   ;;  %s725_s4 = inlined_call_operand.vmem [shape: f32[1,64], index: 4, kind: input, shape index: {}]   ;;  %s726_s5 = inlined_call_operand.hbm [shape: bf16[64,128], index: 5, kind: input, shape index: {}]   ;;  %s727_s6 = inlined_call_operand.vmem [shape: f32[1,128], index: 6, kind: input, shape index: {}]   ;;  %s728_s7 = inlined_call_operand.hbm [shape: bf16[16,128], index: 7, kind: output, shape index: {}]  }
   0x1   :  { %13 = vsyncpa [#allocation6], 0 }
   0x2   :  { %14 = vsyncpa [#allocation9], 0 }
   0x3   :  { %15 = vsyncpa [#allocation4], 0  ;;  %s569_s24 = smov [#allocation5]   ;;  %s570_s26 = smov [#allocation2]  }
   0x4   :  { %s33_s25 = sshll.u32 %s569_s24, 4  ;;  %s21_s27 = sshll.u32 %s570_s26, 4  ;;  %s34_s25 = int_to_ptr.vmem [resolvable:$true] %s33_s25  ;;  %s618_s27 = int_to_ptr.vmem [resolvable:$true] %s21_s27 }
   0x5   :  { %s451_s30 = scalar_lea.hbm %s722_s1, 256 }
   0x6   :  { %p452_p0 = scmp.ne.s32.totalorder %s722_s1, %s451_s30  ;;  %p455_p1 = scmp.lt.u32.totalorder %s451_s30, %s722_s1 }
   0x8   :  { %p457_p2 = pnand %p455_p1, %p452_p0 }
   0xa   :  { %460 = shalt.err (!%p457_p2)
}
   0xb   :  { %s461_s12 = scalar_lea.vmem %s34_s25, 256  ;;  %p466_p4 = scmp.lt.s32.totalorder %s34_s25, %s34_s25 }
   0xc   :  { %p462_p3 = scmp.ne.s32.totalorder %s34_s25, %s461_s12  ;;  %p467_p5 = scmp.lt.s32.totalorder %s461_s12, %s461_s12 }
   0xe   :  { %p468_p6 = por %p467_p5, %p466_p4 }
  0x10   :  { %p469_p7 = pnand %p468_p6, %p462_p3 }
  0x12   :  { %472 = shalt.err (!%p469_p7)
}
  0x13   :  { %s571_s13 = smov 64   ;;  %s572_s14 = smov 4  }
  0x14   :  { %39 = dma.hbm_to_vmem [thread:$0]  %s722_s1, 256, %s34_s25, [#allocation6], %s571_s13, %s571_s13, %s572_s14  }
  0x15   :  { %s473_s19 = scalar_lea.hbm %s721_s0, 128 }
  0x16   :  { %p474_p8 = scmp.ne.s32.totalorder %s721_s0, %s473_s19  ;;  %p477_p9 = scmp.lt.u32.totalorder %s473_s19, %s721_s0 }
  0x18   :  { %p479_p10 = pnand %p477_p9, %p474_p8 }
  0x1a   :  { %482 = shalt.err (!%p479_p10)
}
  0x1b   :  { %s483_s24 = scalar_lea.vmem %s618_s27, 128  ;;  %p488_p12 = scmp.lt.s32.totalorder %s618_s27, %s618_s27 }
  0x1c   :  { %p484_p11 = scmp.ne.s32.totalorder %s618_s27, %s483_s24  ;;  %p489_p13 = scmp.lt.s32.totalorder %s483_s24, %s483_s24 }
  0x1e   :  { %p490_p0 = por %p489_p13, %p488_p12 }
  0x20   :  { %p491_p1 = pnand %p490_p0, %p484_p11 }
  0x22   :  { %494 = shalt.err (!%p491_p1)
}
  0x23   :  { %27 = dma.hbm_to_vmem [thread:$0]  %s721_s0, 128, %s618_s27, [#allocation3], %s571_s13, %s571_s13, %s572_s14  }
  0x24   :  { %s573_s26 = smov [#allocation7]   ;;  %s574_s29 = smov [#allocation8]  }
  0x25   :  { %s47_s28 = sshll.u32 %s573_s26, 4  ;;  %s61_s30 = sshll.u32 %s574_s29, 4  ;;  %s48_s28 = int_to_ptr.vmem [resolvable:$true] %s47_s28  ;;  %s655_s30 = int_to_ptr.vmem [resolvable:$true] %s61_s30 }
  0x26   :  { %s495_s10 = scalar_lea.hbm %s724_s3, 512 }
  0x27   :  { %p496_p2 = scmp.ne.s32.totalorder %s724_s3, %s495_s10  ;;  %p499_p3 = scmp.lt.u32.totalorder %s495_s10, %s724_s3 }
  0x29   :  { %p501_p4 = pnand %p499_p3, %p496_p2 }
  0x2b   :  { %504 = shalt.err (!%p501_p4)
}
  0x2c   :  { %s505_s0 = scalar_lea.vmem %s48_s28, 512  ;;  %p510_p6 = scmp.lt.s32.totalorder %s48_s28, %s48_s28 }
  0x2d   :  { %p506_p5 = scmp.ne.s32.totalorder %s48_s28, %s505_s0  ;;  %p511_p7 = scmp.lt.s32.totalorder %s505_s0, %s505_s0 }
  0x2f   :  { %p512_p8 = por %p511_p7, %p510_p6 }
  0x31   :  { %p513_p9 = pnand %p512_p8, %p506_p5 }
  0x33   :  { %516 = shalt.err (!%p513_p9)
}
  0x34   :  { %53 = dma.hbm_to_vmem [thread:$0]  %s724_s3, 512, %s48_s28, [#allocation6], %s571_s13, %s571_s13, %s572_s14  }
  0x35   :  { %s517_s20 = scalar_lea.hbm %s726_s5, 512 }
  0x36   :  { %p518_p10 = scmp.ne.s32.totalorder %s726_s5, %s517_s20  ;;  %p521_p11 = scmp.lt.u32.totalorder %s517_s20, %s726_s5 }
  0x38   :  { %p523_p12 = pnand %p521_p11, %p518_p10 }
  0x3a   :  { %526 = shalt.err (!%p523_p12)
}
  0x3b   :  { %s527_s1 = scalar_lea.vmem %s655_s30, 512  ;;  %p532_p0 = scmp.lt.s32.totalorder %s655_s30, %s655_s30 }
  0x3c   :  { %p528_p13 = scmp.ne.s32.totalorder %s655_s30, %s527_s1  ;;  %p533_p1 = scmp.lt.s32.totalorder %s527_s1, %s527_s1 }
  0x3e   :  { %p534_p2 = por %p533_p1, %p532_p0 }
  0x40   :  { %p535_p3 = pnand %p534_p2, %p528_p13 }
  0x42   :  { %538 = shalt.err (!%p535_p3)
}
  0x43   :  { %67 = dma.hbm_to_vmem [thread:$0]  %s726_s5, 512, %s655_s30, [#allocation9], %s571_s13, %s571_s13, %s572_s14  }
  0x44   :  { %561 = dma.done.wait [#allocation3], 128  }
  0x45   :  { %562 = vsyncadd [#allocation3], 4294967168 }
  0x46   :  { %563 = dma.done.wait [#allocation6], 768  }
  0x47   :  { %564 = vsyncadd [#allocation6], 4294966528 }
  0x48   :  { %565 = dma.done.wait [#allocation9], 512  }
  0x49   :  { %566 = vsyncadd [#allocation9], 4294966784  ;;  %v575_v0 = vmov 0.0   ;;  %vm576_vm0 = vmmov 0   ;;  %v440_v1 = vld [vmem:[#allocation5] sm:$0xff]   ;;  %v441_v2 = vld [vmem:[#allocation5 + $0x8] sm:$0xff]  }
  0x4a   :  { %399 = vmatprep.subr.bf16.mxu0 %v575_v0  ;;  %403 = vmatprep.mubr.msk.bf16.mxu0 %vm576_vm0, %v575_v0  ;;  %v443_v3 = vld [vmem:[#allocation7] sm:$0xff]   ;;  %v442_v4 = vld [vmem:[#allocation2] sm:$0xff]   ;;  %vm113_vm1 = vcmask 261120   ;;  %v445_v6 = vld [vmem:[#allocation7 + $0x10] sm:$0xff]   ;;  %vm200_vm2 = vcmask 523264   ;;  %s577_s8 = smov [#allocation10]  }
  0x4b   :  { %407 = vmatprep.subr.bf16.mxu1 %v575_v0  ;;  %415 = vmatprep.mubr.msk.bf16.mxu1 %vm576_vm0, %v575_v0  ;;  %v444_v5 = vld [vmem:[#allocation7 + $0x8] sm:$0xff]   ;;  %v446_v7 = vld [vmem:[#allocation7 + $0x18] sm:$0xff]   ;;  %v447_v8 = vld [vmem:[#allocation8] sm:$0xff]  }
  0x4c   :  { %400 = vmatpush3.bf16.msra.mxu0 %v440_v1  ;;  %408 = vmatpush3.bf16.msra.mxu1 %v443_v3  ;;  %v448_v9 = vld [vmem:[#allocation8 + $0x8] sm:$0xff]   ;;  %v449_v20 = vld [vmem:[#allocation8 + $0x10] sm:$0xff]   ;;  %v450_v21 = vld [vmem:[#allocation8 + $0x18] sm:$0xff]  }
  0x4d   :  { %401 = vmatprep.subr.bf16.mxu0 %v575_v0  ;;  %409 = vmatprep.subr.bf16.mxu1 %v575_v0  ;;  %v360_v10 = vld [vmem:[%s723_s2] ss:$0 sm:$0xff] }
  0x4e   :  { %v365_v22 = vld [vmem:[%s725_s4] ss:$0 sm:$0xff]  ;;  %s346_s4 = sshll.u32 %s577_s8, 4  ;;  %s347_s4 = int_to_ptr.vmem [resolvable:$true] %s346_s4 }
  0x4f   :  { %v371_v32 = vld [vmem:[%s727_s6] ss:$0 sm:$0xff]  ;;  %s539_s9 = scalar_lea.vmem %s347_s4, 128  ;;  %p544_p5 = scmp.lt.s32.totalorder %s347_s4, %s347_s4 }
  0x50   :  { %402 = vmatpush3.bf16.msra.mxu0 %v441_v2  ;;  %410 = vmatpush3.bf16.msra.mxu1 %v444_v5  ;;  %p540_p4 = scmp.ne.s32.totalorder %s347_s4, %s539_s9  ;;  %p545_p6 = scmp.lt.s32.totalorder %s539_s9, %s539_s9 }
  0x51   :  { %419 = vmatprep.subr.bf16.mxu0 %v575_v0  ;;  %411 = vmatprep.subr.bf16.mxu1 %v575_v0 }
  0x52   :  { %p546_p7 = por %p545_p6, %p544_p5 }
  0x53   :  { %404 = vmatmul.mubr.msk.bf16.vlgmr.msra.gmra.mrb[0].mxu0 %vm113_vm1, %v442_v4 }
  0x54   :  { %427 = vmatprep.mubr.msk.bf16.mxu0 %vm576_vm0, %v575_v0  ;;  %412 = vmatpush3.bf16.msra.mxu1 %v445_v6  ;;  %p547_p8 = pnand %p546_p7, %p540_p4 }
  0x55   :  { %413 = vmatprep.subr.bf16.mxu1 %v575_v0  ;;  %420 = vmatpush3.bf16.msra.mxu0 %v447_v8 }
  0x56   :  { %421 = vmatprep.subr.bf16.mxu0 %v575_v0 }
  0x58   :  { %414 = vmatpush3.bf16.msra.mxu1 %v446_v7 }
  0x59   :  { %422 = vmatpush3.bf16.msra.mxu0 %v448_v9 }
  0x5a   :  { %423 = vmatprep.subr.bf16.mxu0 %v575_v0 }
  0x5d   :  { %424 = vmatpush3.bf16.msra.mxu0 %v449_v20 }
  0x5e   :  { %425 = vmatprep.subr.bf16.mxu0 %v575_v0 }
  0x61   :  { %426 = vmatpush3.bf16.msra.mxu0 %v450_v21 }
 0x126   :  { %v151_v11 = vpop.f32.mrb[0].mxu0 }
 0x127   :  { %v152_v12 = vadd.f32 %v360_v10, %v151_v11  ;;  %v405_v13 = vpop.f32.mrb[1].mxu0 }
 0x128   :  { %v154_v14 = vpop.f32.mrb[2].mxu0 }
 0x129   :  { %v155_v15 = vadd.f32 %v360_v10, %v154_v14  ;;  %v406_v16 = vpop.f32.mrb[3].mxu0  ;;  %v158_v17 = vmax.f32 %v152_v12, 0.0 }
 0x12b   :  { %v159_v18 = vmax.f32 %v155_v15, 0.0 }
 0x12d   :  { %v160_v19 = vpack.c.bf16 %v159_v18, %v158_v17 }
 0x12f   :  { %416 = vmatmul.mubr.msk.bf16.vlgmr.msra.gmra.mrb[0].mxu1 %vm200_vm2, %v160_v19 }
 0x202   :  { %v238_v23 = vpop.f32.mrb[0].mxu1 }
 0x203   :  { %v239_v24 = vadd.f32 %v365_v22, %v238_v23  ;;  %v417_v25 = vpop.f32.mrb[1].mxu1 }
 0x204   :  { %v241_v26 = vpop.f32.mrb[2].mxu1 }
 0x205   :  { %v242_v27 = vadd.f32 %v365_v22, %v241_v26  ;;  %v418_v28 = vpop.f32.mrb[3].mxu1  ;;  %v245_v29 = vmax.f32 %v239_v24, 0.0 }
 0x207   :  { %v246_v30 = vmax.f32 %v242_v27, 0.0 }
 0x209   :  { %v247_v31 = vpack.c.bf16 %v246_v30, %v245_v29 }
 0x20b   :  { %428 = vmatmul.mubr.msk.bf16.vlgmr.msra.gmra.mrb[4].mxu0 %vm200_vm2, %v247_v31 }
 0x2de   :  { %v324_v33 = vpop.f32.mrb[4].mxu0 }
 0x2df   :  { %v429_v34 = vpop.f32.mrb[5].mxu0  ;;  %v325_v36 = vadd.f32 %v371_v32, %v324_v33 }
 0x2e0   :  { %v327_v35 = vpop.f32.mrb[6].mxu0 }
 0x2e1   :  { %v328_v37 = vadd.f32 %v371_v32, %v327_v35  ;;  %v430_v38 = vpop.f32.mrb[7].mxu0 }
 0x2e3   :  { %v384_v39 = vpack.c.bf16 %v328_v37, %v325_v36 }
 0x2e5   :  { %385 = vst [vmem:[#allocation10] sm:$0xff] %v384_v39  }
 0x2e6   :  { %550 = shalt.err (!%p547_p8)
}
 0x2e7   :  { %s551_s11 = scalar_lea.hbm %s728_s7, 128 }
 0x2e8   :  { %p552_p9 = scmp.ne.s32.totalorder %s728_s7, %s551_s11  ;;  %p555_p10 = scmp.lt.u32.totalorder %s551_s11, %s728_s7 }
 0x2ea   :  { %p557_p11 = pnand %p555_p10, %p552_p9 }
 0x2ec   :  { %560 = shalt.err (!%p557_p11)
}
 0x2ed   :  { %352 = dma.vmem_to_hbm [thread:$0]  %s347_s4, 128, %s728_s7, [#allocation4], %s571_s13, %s571_s13, %s572_s14  }
 0x2ee   :  { %567 = dma.done.wait [#allocation4], 128  }
 0x2ef   :  { %568 = vsyncadd [#allocation4], 4294967168 }
 0x2f0   :  { %356 = vsyncpa [#allocation3], 1 }
 0x2f1   :  { %357 = vsyncpa [#allocation6], 1 }
 0x2f2   :  { %358 = vsyncpa [#allocation9], 1 }
 0x2f3   :  { %359 = vsyncpa [#allocation4], 1 }

</bundles_post_ra>
